<compile_context>
chip_gen: v7x
topology: tpu7x:2x2x1
jax: 0.10.0
libtpu: 0.0.40
codegen_flags: <defaults>
</compile_context>

<pallas_src>
import functools
import math

import jax
import jax.numpy as jnp
from jax import lax
from jax.experimental import pallas as pl
from jax.experimental.pallas import tpu as pltpu


def _vmem_limit_bytes(per_step_io_bytes: int, tmp_bytes: int) -> int:
    """Scoped-VMEM request: double-buffered IO + temporaries + headroom."""
    est = 2 * per_step_io_bytes + tmp_bytes
    est = int(est * 1.25) + (2 << 20)
    return int(max(16 << 20, min(est, 64 << 20)))


# --------------------------------------------------------------------------
# Kernel 1: fused QKV projection (channel-major), scaling folded into Q rows.
# --------------------------------------------------------------------------
def _qkv_kernel(x_ref, wqkv_ref, bqkv_ref, q_ref, k_ref, v_ref, *, hd):
    # x_ref:    (1, C, TS) f32
    # wqkv_ref: (3*hd, C) bf16, rows ordered [Q heads | K heads | V heads]
    # bqkv_ref: (3*hd, 1) f32
    # outputs:  (1, hd, TS) bf16 each
    xb = x_ref[0].astype(jnp.bfloat16)
    qkv = jnp.dot(wqkv_ref[...], xb, preferred_element_type=jnp.float32)
    qkv = (qkv + bqkv_ref[...]).astype(jnp.bfloat16)   # one fused bias+cast pass
    q_ref[0] = qkv[0:hd, :]
    k_ref[0] = qkv[hd:2 * hd, :]
    v_ref[0] = qkv[2 * hd:3 * hd, :]


# --------------------------------------------------------------------------
# Kernel 2: attention (query-tiled) + merged output projection + residual.
# --------------------------------------------------------------------------
def _attn_kernel(q_ref, k_ref, v_ref, x_ref, wo_ref, bo_ref, o_ref, res_sc,
                 *, n_heads, d_k, s_real, s_pad):
    # q_ref: (1, hd, TQ) bf16 (scaling already folded in)
    # k_ref, v_ref: (1, hd, S_pad) bf16
    # x_ref: (1, C, TQ) f32  (residual, read only in the epilogue)
    # wo_ref: (C, hd) bf16 ; bo_ref: (C, 1) f32 ; o_ref: (1, C, TQ) f32
    # res_sc: (TQ, hd) bf16 VMEM scratch (per-head results, merged projection)
    need_mask = s_pad != s_real
    if need_mask:
        key_valid = lax.broadcasted_iota(jnp.int32, (1, s_pad), 1) < s_real

    q = q_ref[0]                       # (hd, TQ) bf16
    k = k_ref[0]                       # (hd, S_pad) bf16
    v = v_ref[0]                       # (hd, S_pad) bf16

    # Static head loop (module default n_heads is 1-2); each head's (TQ, S)
    # temporaries die inside the iteration and results go to VMEM scratch.
    for h in range(n_heads):
        lo, hi = h * d_k, (h + 1) * d_k
        qh = q[lo:hi, :]               # (d_k, TQ)
        kh = k[lo:hi, :]               # (d_k, S_pad)
        vh = v[lo:hi, :]               # (d_k, S_pad)

        # s[i, j] = sum_d qh[d, i] * kh[d, j]   (scaling folded into qh)
        s = lax.dot_general(qh, kh, (((0,), (0,)), ((), ())),
                            preferred_element_type=jnp.float32)   # (TQ, S_pad)
        if need_mask:                  # mask padded key columns (static branch)
            s = jnp.where(key_valid, s, -1e30)

        # softmax statistics in f32; normalization deferred past the PV matmul
        m = jnp.max(s, axis=-1, keepdims=True)                    # (TQ, 1)
        p = jnp.exp(s - m)                                        # (TQ, S_pad)
        denom = jnp.sum(p, axis=-1, keepdims=True)                # (TQ, 1)

        # res[i, d] = sum_j p[i, j] * vh[d, j]   (un-normalized PV)
        resh = lax.dot_general(p.astype(jnp.bfloat16), vh,
                               (((1,), (1,)), ((), ())),
                               preferred_element_type=jnp.float32)  # (TQ, d_k)
        # Deferred normalization: scale TQ*d_k elements instead of TQ*S.
        resh = resh * pl.reciprocal(denom, approx=True)
        res_sc[:, lo:hi] = resh.astype(jnp.bfloat16)

    # ONE merged output projection across all heads (contraction depth = hd).
    out = lax.dot_general(wo_ref[...], res_sc[...],
                          (((1,), (1,)), ((), ())),
                          preferred_element_type=jnp.float32)       # (C, TQ)
    # bias + residual epilogue (f32), lane-dense (TQ) store.
    o_ref[0] = (out + bo_ref[...] + x_ref[0]).astype(o_ref.dtype)


# --------------------------------------------------------------------------
# Wrapper
# --------------------------------------------------------------------------
def attention_block_forward(x, params, *, n_heads: int, d_k: int):
    """AttentionBlock.forward(x) with Pallas TPU kernels.

    x: (B, C, H, W) float32 (NCHW, matching PyTorch)
    params: dict with
      wp: (3*n_heads*d_k, C)  projection.weight (PyTorch (out, in))
      bp: (3*n_heads*d_k,)    projection.bias
      wo: (C, n_heads*d_k)    output.weight
      bo: (C,)                output.bias
    """
    B, C, H, W = x.shape
    S = H * W
    hd = n_heads * d_k
    scaling = d_k ** (-0.5)

    # bf16 sublane-packing friendliness of the per-head slices.
    assert hd % 8 == 0 and d_k % 8 == 0, "n_heads*d_k and d_k must be multiples of 8"

    # Pad the flattened spatial axis to a multiple of 128 (lane-dense stores).
    S_pad = ((S + 127) // 128) * 128
    x_cs = x.reshape(B, C, S).astype(jnp.float32)
    if S_pad != S:
        x_cs = jnp.pad(x_cs, ((0, 0), (0, 0), (0, S_pad - S)))

    # --- one-time wrapper-side weight permutation -------------------------
    # PyTorch row index f = h*3*d_k + part*d_k + d  (part in {q,k,v}).
    wp_r = params["wp"].reshape(n_heads, 3, d_k, C)
    bp_r = params["bp"].reshape(n_heads, 3, d_k)
    wqkv = jnp.transpose(wp_r, (1, 0, 2, 3)).reshape(3 * hd, C)
    bqkv = jnp.transpose(bp_r, (1, 0, 2)).reshape(3 * hd, 1)
    # Fold the attention scaling into the Q rows (weight AND bias).
    scale_col = jnp.concatenate(
        [jnp.full((hd, 1), scaling, jnp.float32),
         jnp.ones((2 * hd, 1), jnp.float32)], axis=0)
    wqkv = (wqkv * scale_col).astype(jnp.bfloat16)      # (3*hd, C) bf16
    bqkv = (bqkv * scale_col).astype(jnp.float32)       # (3*hd, 1) f32
    wo = params["wo"].astype(jnp.bfloat16)              # (C, hd), kept merged
    bo = params["bo"].reshape(C, 1).astype(jnp.float32)

    # --- tile sizes (always multiples of 128 along the lane axis) ---------
    TS = 512 if S_pad % 512 == 0 else (256 if S_pad % 256 == 0 else 128)
    TQ = 256 if S_pad % 256 == 0 else 128

    # --- kernel 1: fused QKV projection ------------------------------------
    io1 = C * TS * 4 + 3 * hd * C * 2 + 3 * hd * 4 + 3 * hd * TS * 2
    tmp1 = 3 * hd * TS * 4 + C * TS * 2
    q, k, v = pl.pallas_call(
        functools.partial(_qkv_kernel, hd=hd),
        out_shape=tuple(jax.ShapeDtypeStruct((B, hd, S_pad), jnp.bfloat16)
                        for _ in range(3)),
        grid_spec=pltpu.PrefetchScalarGridSpec(
            num_scalar_prefetch=0,
            grid=(B, S_pad // TS),
            in_specs=[
                pl.BlockSpec((1, C, TS), lambda b, si: (b, 0, si)),
                pl.BlockSpec((3 * hd, C), lambda b, si: (0, 0)),
                pl.BlockSpec((3 * hd, 1), lambda b, si: (0, 0)),
            ],
            out_specs=[pl.BlockSpec((1, hd, TS), lambda b, si: (b, 0, si))] * 3,
        ),
        compiler_params=pltpu.CompilerParams(
            dimension_semantics=("parallel", "parallel"),
            vmem_limit_bytes=_vmem_limit_bytes(io1, tmp1)),
    )(x_cs, wqkv, bqkv)

    # --- kernel 2: attention + merged output projection + residual ---------
    io2 = (hd * TQ * 2 + 2 * hd * S_pad * 2 + C * TQ * 4 + C * hd * 2 + C * 4
           + C * TQ * 4)
    tmp2 = TQ * S_pad * 4 + TQ * S_pad * 2 + TQ * hd * 6 + C * TQ * 4
    out_cs = pl.pallas_call(
        functools.partial(_attn_kernel, n_heads=n_heads, d_k=d_k,
                          s_real=S, s_pad=S_pad),
        out_shape=jax.ShapeDtypeStruct((B, C, S_pad), jnp.float32),
        grid_spec=pltpu.PrefetchScalarGridSpec(
            num_scalar_prefetch=0,
            grid=(B, S_pad // TQ),
            in_specs=[
                pl.BlockSpec((1, hd, TQ), lambda b, qi: (b, 0, qi)),
                pl.BlockSpec((1, hd, S_pad), lambda b, qi: (b, 0, 0)),
                pl.BlockSpec((1, hd, S_pad), lambda b, qi: (b, 0, 0)),
                pl.BlockSpec((1, C, TQ), lambda b, qi: (b, 0, qi)),
                pl.BlockSpec((C, hd), lambda b, qi: (0, 0)),
                pl.BlockSpec((C, 1), lambda b, qi: (0, 0)),
            ],
            out_specs=pl.BlockSpec((1, C, TQ), lambda b, qi: (b, 0, qi)),
            scratch_shapes=[pltpu.VMEM((TQ, hd), jnp.bfloat16)],
        ),
        compiler_params=pltpu.CompilerParams(
            dimension_semantics=("parallel", "parallel"),
            vmem_limit_bytes=_vmem_limit_bytes(io2, tmp2)),
    )(q, k, v, x_cs, wo, bo)

    if S_pad != S:
        out_cs = out_cs[:, :, :S]
    return out_cs.reshape(B, C, H, W)


# --------------------------------------------------------------------------
# Init + pure-JAX reference + checks
# --------------------------------------------------------------------------
def _init_params(key, n_dim, n_heads, d_k):
    """Deterministic init mirroring init_weights: xavier_normal weights, zero bias."""
    k1, k2 = jax.random.split(key)
    out_p = n_heads * d_k * 3
    std_p = math.sqrt(2.0 / (n_dim + out_p))
    std_o = math.sqrt(2.0 / (n_heads * d_k + n_dim))
    return {
        "wp": std_p * jax.random.normal(k1, (out_p, n_dim), jnp.float32),
        "bp": jnp.zeros((out_p,), jnp.float32),
        "wo": std_o * jax.random.normal(k2, (n_dim, n_heads * d_k), jnp.float32),
        "bo": jnp.zeros((n_dim,), jnp.float32),
    }


def _reference_forward(x, params, *, n_heads, d_k):
    """Pure-JAX f32 reference of the PyTorch forward, for correctness checks."""
    B, C, H, W = x.shape
    S = H * W
    scaling = d_k ** (-0.5)
    xs = jnp.transpose(x.reshape(B, C, S), (0, 2, 1))            # (B, S, C)
    qkv = xs @ params["wp"].T + params["bp"]                     # (B, S, 3*H*d_k)
    qkv = qkv.reshape(B, S, n_heads, 3 * d_k)
    q, k, v = jnp.split(qkv, 3, axis=-1)
    attn = jnp.einsum("bihd,bjhd->bijh", q, k) * scaling
    attn = jax.nn.softmax(attn, axis=2)
    res = jnp.einsum("bijh,bjhd->bihd", attn, v).reshape(B, S, n_heads * d_k)
    res = res @ params["wo"].T + params["bo"] + xs
    return jnp.transpose(res, (0, 2, 1)).reshape(B, C, H, W)


def _check(B, n_dim, H, W, n_heads, d_k, seed):
    key = jax.random.PRNGKey(seed)
    kx, kp = jax.random.split(key)
    x = jax.random.normal(kx, (B, n_dim, H, W), jnp.float32)
    params = _init_params(kp, n_dim, n_heads, d_k)

    out = attention_block_forward(x, params, n_heads=n_heads, d_k=d_k)
    out = jax.block_until_ready(out)

    ref = _reference_forward(x, params, n_heads=n_heads, d_k=d_k)
    assert out.shape == (B, n_dim, H, W)
    # bf16 matmuls + approx reciprocal -> looser tolerance than pure f32.
    assert jnp.allclose(out, ref, rtol=5e-2, atol=5e-2), (
        float(jnp.max(jnp.abs(out - ref))))


if __name__ == "__main__":
    # Module defaults: n_heads=1, d_k = n_dim.
    _check(B=2, n_dim=32, H=8, W=8, n_heads=1, d_k=32, seed=0)
    # Multi-head configuration exercises the per-head scratch / merged-proj path.
    _check(B=2, n_dim=32, H=8, W=8, n_heads=2, d_k=16, seed=0)
    print("KERNEL_OK")
</pallas_src>

<mosaic_0001>
module attributes {stable_mosaic.version = 11 : i64} {
  func.func @_qkv_kernel(%arg0: i32, %arg1: i32, %arg2: memref<1x32x128xf32, #tpu.memory_space<vmem>>, %arg3: memref<96x32xbf16, #tpu.memory_space<vmem>>, %arg4: memref<96x1xf32, #tpu.memory_space<vmem>>, %arg5: memref<1x32x128xbf16, #tpu.memory_space<vmem>>, %arg6: memref<1x32x128xbf16, #tpu.memory_space<vmem>>, %arg7: memref<1x32x128xbf16, #tpu.memory_space<vmem>>) attributes {dimension_semantics = [#tpu.dimension_semantics<parallel>, #tpu.dimension_semantics<parallel>], iteration_bounds = array<i64: 2, 1>, scalar_prefetch = 0 : i64, scratch_operands = 0 : i64, tpu.core_type = #tpu.core_type<tc>, window_params = [{transform_indices = @transform_0, window_bounds = array<i64: 1, 32, 128>}, {pipeline_mode = #tpu.pipeline_mode<synchronous>, transform_indices = @transform_1, window_bounds = array<i64: 96, 32>}, {pipeline_mode = #tpu.pipeline_mode<synchronous>, transform_indices = @transform_2, window_bounds = array<i64: 96, 1>}, {transform_indices = @transform_3, window_bounds = array<i64: 1, 32, 128>}, {transform_indices = @transform_4, window_bounds = array<i64: 1, 32, 128>}, {transform_indices = @transform_5, window_bounds = array<i64: 1, 32, 128>}]} {
    %c0 = arith.constant 0 : index
    %c0_0 = arith.constant 0 : index
    %c0_1 = arith.constant 0 : index
    %0 = vector.load %arg2[%c0, %c0_0, %c0_1] : memref<1x32x128xf32, #tpu.memory_space<vmem>>, vector<1x32x128xf32>
    %1 = vector.shape_cast %0 : vector<1x32x128xf32> to vector<32x128xf32>
    %2 = arith.truncf %1 : vector<32x128xf32> to vector<32x128xbf16>
    %c0_2 = arith.constant 0 : index
    %c0_3 = arith.constant 0 : index
    %3 = vector.load %arg3[%c0_2, %c0_3] : memref<96x32xbf16, #tpu.memory_space<vmem>>, vector<96x32xbf16>
    %cst = arith.constant dense<0.000000e+00> : vector<96x128xf32>
    %4 = tpu.matmul %3, %2, %cst {dimension_numbers = #tpu.dot_dimension_numbers<[1], [0], [0], [1], [0, 0, 1, 1], [], []>} : vector<96x32xbf16>, vector<32x128xbf16>, vector<96x128xf32> -> vector<96x128xf32>
    %c0_4 = arith.constant 0 : index
    %c0_5 = arith.constant 0 : index
    %5 = vector.load %arg4[%c0_4, %c0_5] : memref<96x1xf32, #tpu.memory_space<vmem>>, vector<96x1xf32>
    %6 = vector.broadcast %5 : vector<96x1xf32> to vector<96x128xf32>
    %7 = arith.addf %4, %6 : vector<96x128xf32>
    %8 = arith.truncf %7 : vector<96x128xf32> to vector<96x128xbf16>
    %9 = vector.extract_strided_slice %8 {offsets = [0, 0], sizes = [32, 128], strides = [1, 1]} : vector<96x128xbf16> to vector<32x128xbf16>
    %c0_6 = arith.constant 0 : index
    %c0_7 = arith.constant 0 : index
    %c0_8 = arith.constant 0 : index
    %10 = vector.load %arg5[%c0_6, %c0_7, %c0_8] : memref<1x32x128xbf16, #tpu.memory_space<vmem>>, vector<1x32x128xbf16>
    %11 = vector.shape_cast %10 : vector<1x32x128xbf16> to vector<32x128xbf16>
    %12 = vector.shape_cast %9 : vector<32x128xbf16> to vector<1x32x128xbf16>
    tpu.vector_store %arg5[%c0_6, %c0_7, %c0_8], %12 {strides = array<i32>} : memref<1x32x128xbf16, #tpu.memory_space<vmem>>, vector<1x32x128xbf16>,
    %13 = vector.extract_strided_slice %8 {offsets = [32, 0], sizes = [32, 128], strides = [1, 1]} : vector<96x128xbf16> to vector<32x128xbf16>
    %c0_9 = arith.constant 0 : index
    %c0_10 = arith.constant 0 : index
    %c0_11 = arith.constant 0 : index
    %14 = vector.load %arg6[%c0_9, %c0_10, %c0_11] : memref<1x32x128xbf16, #tpu.memory_space<vmem>>, vector<1x32x128xbf16>
    %15 = vector.shape_cast %14 : vector<1x32x128xbf16> to vector<32x128xbf16>
    %16 = vector.shape_cast %13 : vector<32x128xbf16> to vector<1x32x128xbf16>
    tpu.vector_store %arg6[%c0_9, %c0_10, %c0_11], %16 {strides = array<i32>} : memref<1x32x128xbf16, #tpu.memory_space<vmem>>, vector<1x32x128xbf16>,
    %17 = vector.extract_strided_slice %8 {offsets = [64, 0], sizes = [32, 128], strides = [1, 1]} : vector<96x128xbf16> to vector<32x128xbf16>
    %c0_12 = arith.constant 0 : index
    %c0_13 = arith.constant 0 : index
    %c0_14 = arith.constant 0 : index
    %18 = vector.load %arg7[%c0_12, %c0_13, %c0_14] : memref<1x32x128xbf16, #tpu.memory_space<vmem>>, vector<1x32x128xbf16>
    %19 = vector.shape_cast %18 : vector<1x32x128xbf16> to vector<32x128xbf16>
    %20 = vector.shape_cast %17 : vector<32x128xbf16> to vector<1x32x128xbf16>
    tpu.vector_store %arg7[%c0_12, %c0_13, %c0_14], %20 {strides = array<i32>} : memref<1x32x128xbf16, #tpu.memory_space<vmem>>, vector<1x32x128xbf16>,
    return
  }
  func.func @transform_0(%arg0: i32, %arg1: i32) -> (i32, i32, i32) {
    %c0_i32 = arith.constant 0 : i32
    %c0_i32_0 = arith.constant 0 : i32
    return %arg0, %c0_i32, %arg1 : i32, i32, i32
  }
  func.func @transform_1(%arg0: i32, %arg1: i32) -> (i32, i32) {
    %c0_i32 = arith.constant 0 : i32
    %c0_i32_0 = arith.constant 0 : i32
    %c0_i32_1 = arith.constant 0 : i32
    return %c0_i32, %c0_i32_0 : i32, i32
  }
  func.func @transform_2(%arg0: i32, %arg1: i32) -> (i32, i32) {
    %c0_i32 = arith.constant 0 : i32
    %c0_i32_0 = arith.constant 0 : i32
    %c0_i32_1 = arith.constant 0 : i32
    return %c0_i32, %c0_i32_0 : i32, i32
  }
  func.func @transform_3(%arg0: i32, %arg1: i32) -> (i32, i32, i32) {
    %c0_i32 = arith.constant 0 : i32
    %c0_i32_0 = arith.constant 0 : i32
    return %arg0, %c0_i32, %arg1 : i32, i32, i32
  }
  func.func @transform_4(%arg0: i32, %arg1: i32) -> (i32, i32, i32) {
    %c0_i32 = arith.constant 0 : i32
    %c0_i32_0 = arith.constant 0 : i32
    return %arg0, %c0_i32, %arg1 : i32, i32, i32
  }
  func.func @transform_5(%arg0: i32, %arg1: i32) -> (i32, i32, i32) {
    %c0_i32 = arith.constant 0 : i32
    %c0_i32_0 = arith.constant 0 : i32
    return %arg0, %c0_i32, %arg1 : i32, i32, i32
  }
}

</mosaic_0001>

<bundles_post_ra>
// kernel: tpu_custom_call.1
= control target key start
LH: loop header
LB: loop body
LE: loop exit
PB: predicated region body
PF: predicated region fallthrough
CT: control target
= control target key end

     0   :  { %11 = vsyncpa [#allocation3], 0  ;;  %s1410_s0 = inlined_call_operand.vmem [shape: f32[2,32,128], index: 0, kind: input, shape index: {}]   ;;  %s1411_s1 = inlined_call_operand.vmem [shape: bf16[96,32], index: 1, kind: input, shape index: {}]   ;;  %s1412_s2 = inlined_call_operand.vmem [shape: f32[96,1], index: 2, kind: input, shape index: {}]   ;;  %s1413_s3 = inlined_call_operand.hbm [shape: bf16[2,32,128], index: 3, kind: output, shape index: {0}]   ;;  %s1414_s4 = inlined_call_operand.hbm [shape: bf16[2,32,128], index: 4, kind: output, shape index: {1}]   ;;  %s1415_s5 = inlined_call_operand.hbm [shape: bf16[2,32,128], index: 5, kind: output, shape index: {2}]  }
   0x1   :  { %13 = vsyncpa [#allocation3 + $0x1], 0 }
   0x2   :  { %14 = vsyncpa [#allocation5], 0 }
   0x3   :  { %16 = vsyncpa [#allocation5 + $0x1], 0  ;;  %s1127_s18 = smov 0   ;;  %s1129_s19 = smov 0  }
   0x4   :  { %s1131_s20 = smov 0   ;;  %s1133_s21 = smov 0  }
   0x5   :  { %s1135_s22 = smov 0   ;;  %s1137_s23 = smov 0  }
   0x6 LB: > { %s753_s24 = sadd.s32 4294967295, %s1089_s23   ;;  %s1416_s25 = sadd.s32 4294967294, %s1089_s23   ;;  %s1089_s23 = sphi %s1137_s23, %s22_s23   ;;  %s1085_s22 = sphi %s1135_s22, %s1428_s22   ;;  %s1081_s21 = sphi %s1133_s21, %s1427_s21   ;;  %s1077_s20 = sphi %s1131_s20, %s1426_s20   ;;  %s1073_s19 = sphi %s1129_s19, %s1425_s19   ;;  %s1069_s18 = sphi %s1127_s18, %s1424_s18  }
   0x7   : > { %s34_s26 = sadd.s32 1, %s1085_s22  ;;  %s113_s27 = sadd.s32 1, %s1077_s20 }
   0x8   : > { %p36_p0 = scmp.ge.s32.totalorder %s34_s26, 2  ;;  %p123_p1 = scmp.ne.s32.totalorder %s1077_s20, %s1073_s19 }
   0x9   : > { %p124_p2 = scmp.eq.s32.totalorder %s753_s24, 1  ;;  %p129_p3 = scmp.ne.s32.totalorder %s1073_s19, %s1069_s18 }
   0xa   : > { %s1430_s26 = smov (%p36_p0, %s34_s26), 0  ;;  %p130_p5 = scmp.eq.s32.totalorder %s1416_s25, 1 }
   0xb   : > { %p1169_p4 = por %p124_p2, %p123_p1  ;;  %s108_s29 = ssub.s32 %s1085_s22, %s1430_s26 }
   0xc   : > { %p757_p6 = scmp.ge.s32.totalorder %s1089_s23, 1  ;;  %p111_p7 = scmp.eq.s32.totalorder %s108_s29, 0 }
   0xd   : > { %p1178_p8 = por %p130_p5, %p129_p3  ;;  %p221_p9 = scmp.lt.s32.totalorder %s1089_s23, 3 }
   0xe   : > { %s1184_s6 = scalar_select %p111_p7, %s1077_s20, %s113_s27  }
   0xf   : > { %p222_p10 = pnand %p757_p6, %p221_p9 }
  0x10   : > { %p262_p11 = scmp.lt.s32.totalorder (!%p222_p10), %s1081_s21, 1  ;;  %v945_v0 = vld [vmem:[%s1411_s1] sm:$0xff] (!%p222_p10)   ;;  %vm391_vm0 = vcmask (!%p222_p10), 261120   ;;  %v946_v1 = vld [vmem:[%s1411_s1 + $0x10] sm:$0xff] (!%p222_p10)   ;;  %v1091_v2 = vmov (!%p222_p10), 0   ;;  %v296_v11 = vld [vmem:[%s1412_s2 + $0x38] sm:$0xff] (!%p222_p10) }
  0x11   : > { %225 = sbr.rel (%p222_p10) target bundleno = 323 (0x143), region = 32  ;;  %859 = vmatprep.mubr.msk.bf16.mxu0 (!%p222_p10), %vm391_vm0, %v945_v0  ;;  %863 = vmatprep.mubr.msk.bf16.mxu1 (!%p222_p10), %vm391_vm0, %v946_v1  ;;  %v295_v8 = vld [vmem:[%s1412_s2 + $0x30] sm:$0xff] (!%p222_p10)  ;;  %v293_v9 = vld [vmem:[%s1412_s2 + $0x20] sm:$0xff] (!%p222_p10)  ;;  %v294_v12 = vld [vmem:[%s1412_s2 + $0x28] sm:$0xff] (!%p222_p10)  ;;  %s1417_s9 = sand.u32 (!%p222_p10), 1, %s1073_s19  }
  0x12   : > { %944 = vset.pattern.permute.xlu1 (!%p222_p10), %v1091_v2  ;;  %943 = vset.pattern.permute.xlu0 (!%p222_p10), %v1091_v2  ;;  %v947_v13 = vld [vmem:[%s1411_s1 + $0x8] sm:$0xff] (!%p222_p10)   ;;  %v948_v14 = vld [vmem:[%s1411_s1 + $0x18] sm:$0xff] (!%p222_p10)   ;;  %v289_v16 = vld [vmem:[%s1412_s2] sm:$0xff] (!%p222_p10)  ;;  %s1254_s10 = sshll.u32 (!%p222_p10), %s1417_s9, 4  ;;  %s1264_s13 = sand.u32 (!%p222_p10), 1, %s753_s24  }
  0x13   : > { %333 = vperm.xlu1 (!%p222_p10), %944, %v295_v8   ;;  %323 = vperm.xlu0 (!%p222_p10), %943, %v293_v9   ;;  %v290_v15 = vld [vmem:[%s1412_s2 + $0x8] sm:$0xff] (!%p222_p10)  ;;  %v949_v17 = vld [vmem:[%s1411_s1 + $0x20] sm:$0xff] (!%p222_p10)   ;;  %v292_v18 = vld [vmem:[%s1412_s2 + $0x18] sm:$0xff] (!%p222_p10)  ;;  %s1267_s14 = sshll.u32 (!%p222_p10), %s1081_s21, 8  ;;  %s1418_s8 = scalar_lea.sflag (!%p222_p10), [#allocation5], %s1264_s13 }
  0x14   : > { %v291_v19 = vld [vmem:[%s1412_s2 + $0x10] sm:$0xff] (!%p222_p10)  ;;  %v950_v20 = vld [vmem:[%s1411_s1 + $0x28] sm:$0xff] (!%p222_p10)   ;;  %v297_v22 = vld [vmem:[%s1412_s2 + $0x40] sm:$0xff] (!%p222_p10)  ;;  %s1278_s17 = scalar_lea.hbm (!%p222_p10), %s1414_s4, %s1267_s14  ;;  %s1287_s7 = scalar_lea.hbm (!%p222_p10), %s1413_s3, %s1267_s14 }
  0x15   : > { %v298_v21 = vld [vmem:[%s1412_s2 + $0x48] sm:$0xff] (!%p222_p10)  ;;  %v300_v23 = vld [vmem:[%s1412_s2 + $0x58] sm:$0xff] (!%p222_p10)  ;;  %v299_v24 = vld [vmem:[%s1412_s2 + $0x50] sm:$0xff] (!%p222_p10)  ;;  %s1092_s24 = smov (!%p222_p10), [#allocation4]  }
  0x16   : > { %s955_s25 = sshll.u32 (!%p222_p10), %s1092_s24, 4  ;;  %s956_s25 = int_to_ptr.vmem [resolvable:$false] %s955_s25 }
  0x17   : > { %338 = vperm.xlu1 (!%p222_p10), %944, %v296_v11   ;;  %328 = vperm.xlu0 (!%p222_p10), %943, %v294_v12   ;;  %s957_s9 = scalar_lea.vmem (!%p222_p10), %s956_s25, 512 }
  0x18   : > { %s263_s11 = scalar_select %p262_p11, %s1081_s21, 1 }
  0x1a   : > { %s798_s12 = sshll.u32 %s263_s11, 5  ;;  %s1259_s11 = scalar_lea.vmem [#allocation4], %s1254_s10 }
  0x1b   : > { %s269_s15 = scalar_lea.vmem %s1410_s0, %s798_s12  ;;  %308 = vperm.xlu1 %944, %v290_v15   ;;  %303 = vperm.xlu0 %943, %v289_v16   ;;  %s593_s12 = sshll.u32 %s1259_s11, 4  ;;  %s1272_s12 = int_to_ptr.vmem [resolvable:$true] %s593_s12 }
  0x1c   : > { %v271_v3 = vld [vmem:[%s269_s15] sm:$0xff]  ;;  %v272_v4 = vld [vmem:[%s269_s15 + $0x8] sm:$0xff]  ;;  %v273_v5 = vld [vmem:[%s269_s15 + $0x10] sm:$0xff]  ;;  %s951_s21 = scalar_lea.vmem %s1272_s12, 256  ;;  %p958_p1 = scmp.lt.s32.totalorder %s1272_s12, %s956_s25 }
  0x1d   : > { %v275_v6 = vpack.c.bf16 %v272_v4, %v271_v3  ;;  %v274_v7 = vld [vmem:[%s269_s15 + $0x18] sm:$0xff]  ;;  %s247_s15 = scalar_lea.vmem [#allocation2], %s1254_s10  ;;  %p952_p12 = scmp.ne.s32.totalorder %s1272_s12, %s951_s21 }
  0x1e   : > { %v276_v10 = vpack.c.bf16 %v274_v7, %v273_v5  ;;  %s576_s16 = sshll.u32 %s247_s15, 4  ;;  %p959_p2 = scmp.lt.s32.totalorder %s957_s9, %s951_s21  ;;  %s1280_s16 = int_to_ptr.vmem [resolvable:$true] %s576_s16 }
  0x1f   : > { %855 = vmatprep.subr.bf16.mxu0 %v275_v6  ;;  %871 = vmatprep.subr.bf16.mxu1 %v275_v6  ;;  %p953_p13 = pnand %p952_p12, %p1169_p4 }
  0x20   : > { %856 = vmatpush3.bf16.msra.mxu0 %v275_v6  ;;  %873 = vmatpush3.bf16.msra.mxu1 %v275_v6  ;;  %p960_p3 = por %p959_p2, %p958_p1 }
  0x21   : > { %857 = vmatprep.subr.bf16.mxu0 %v276_v10  ;;  %872 = vmatprep.subr.bf16.mxu1 %v276_v10  ;;  %p954_p0 = pneg %p953_p13 }
  0x22   : > { %318 = vperm.xlu1 %944, %v292_v18   ;;  %313 = vperm.xlu0 %943, %v291_v19  }
  0x23   : > { %p961_p5 = pnand %p960_p3, %p954_p0 }
  0x24   : > { %858 = vmatpush3.bf16.msra.mxu0 %v276_v10  ;;  %874 = vmatpush3.bf16.msra.mxu1 %v276_v10 }
  0x26   : > { %348 = vperm.xlu1 %944, %v298_v21   ;;  %343 = vperm.xlu0 %943, %v297_v22  }
  0x27   : > { %860 = vmatmul.mubr.msk.bf16.vlgmr.msra.gmra.mrb[0].mxu0 %vm391_vm0, %v947_v13  ;;  %864 = vmatmul.mubr.msk.bf16.vlgmr.msra.gmra.mrb[0].mxu1 %vm391_vm0, %v948_v14 }
  0x28   : > { %867 = vmatprep.mubr.msk.bf16.mxu1 %vm391_vm0, %v949_v17 }
  0x2a   : > { %358 = vperm.xlu1 %944, %v300_v23   ;;  %353 = vperm.xlu0 %943, %v299_v24  }
  0x2f   : > { %868 = vmatmul.mubr.msk.bf16.gmra.mrb[4].mxu1 %vm391_vm0, %v950_v20 }
  0x92   : > { %v334_v25 = vpop.permute.xlu1 %333  ;;  %v324_v26 = vpop.permute.xlu0 %323 }
  0x96   : > { %v339_v27 = vpop.permute.xlu1 %338  ;;  %v329_v28 = vpop.permute.xlu0 %328 }
  0x9a   : > { %v309_v29 = vpop.permute.xlu1 %308  ;;  %v304_v30 = vpop.permute.xlu0 %303 }
  0xa1   : > { %v319_v31 = vpop.permute.xlu1 %318  ;;  %v314_v32 = vpop.permute.xlu0 %313 }
  0xa5   : > { %v1256_v33 = vpop.permute.xlu1 %348  ;;  %v1269_v46 = vpop.permute.xlu0 %343 }
  0xa9   : > { %v359_v56 = vpop.permute.xlu1 %358 }
  0xfa   : > { %v861_v34 = vpop.f32.mrb[0].mxu0  ;;  %v865_v35 = vpop.f32.mrb[0].mxu1 }
  0xfb   : > { %v444_v36 = vpop.f32.mrb[1].mxu0  ;;  %v460_v37 = vpop.f32.mrb[1].mxu1  ;;  %v453_v40 = vadd.f32 %v861_v34, %v314_v32  ;;  %v469_v41 = vadd.f32 %v865_v35, %v334_v25 }
  0xfc   : > { %v862_v38 = vpop.f32.mrb[2].mxu0  ;;  %v866_v39 = vpop.f32.mrb[2].mxu1  ;;  %v445_v47 = vadd.f32 %v444_v36, %v304_v30  ;;  %v461_v48 = vadd.f32 %v460_v37, %v324_v26 }
  0xfd   : > { %v456_v42 = vadd.f32 %v862_v38, %v319_v31  ;;  %v472_v43 = vadd.f32 %v866_v39, %v339_v27  ;;  %v447_v44 = vpop.f32.mrb[3].mxu0  ;;  %v463_v45 = vpop.f32.mrb[3].mxu1 }
  0xfe   : > { %v448_v49 = vadd.f32 %v447_v44, %v309_v29  ;;  %v464_v50 = vadd.f32 %v463_v45, %v329_v28 }
  0xff   : > { %v822_v51 = vpack.c.bf16 %v456_v42, %v453_v40  ;;  %v832_v52 = vpack.c.bf16 %v472_v43, %v469_v41 }
 0x100   : > { %v817_v53 = vpack.c.bf16 %v448_v49, %v445_v47  ;;  %v827_v54 = vpack.c.bf16 %v464_v50, %v461_v48 }
 0x101   : > { %844 = vst [vmem:[%s247_s15 + $0x8] sm:$0xff] %v822_v51   ;;  %845 = vst [vmem:[%s1259_s11 + $0x8] sm:$0xff] %v832_v52  }
 0x102   : > { %818 = vst [vmem:[%s247_s15] sm:$0xff] %v817_v53   ;;  %828 = vst [vmem:[%s1259_s11] sm:$0xff] %v827_v54   ;;  %v869_v55 = vpop.f32.mrb[4].mxu1 }
 0x103   : > { %v1290_v57 = vpop.f32.mrb[5].mxu1 }
 0x104   : > { %964 = shalt.err (!%p961_p5)
}
 0x105   : > { %s965_s11 = scalar_lea.hbm %s1278_s17, 256  ;;  %s969_s29 = scalar_lea.hbm %s1414_s4, 512 }
 0x106   : > { %p966_p6 = scmp.ne.s32.totalorder %s1278_s17, %s965_s11  ;;  %p970_p10 = scmp.lt.u32.totalorder %s1278_s17, %s1414_s4 }
 0x107   : > { %p971_p11 = scmp.lt.u32.totalorder %s969_s29, %s965_s11  ;;  %p973_p13 = scmp.lt.u32.totalorder %s965_s11, %s1278_s17 }
 0x108   : > { %p967_p7 = pnand %p966_p6, %p1169_p4 }
 0x109   : > { %p972_p12 = por %p971_p11, %p970_p10 }
 0x10a   : > { %p968_p9 = pneg %p967_p7 }
 0x10b   : > { %p974_p0 = por %p973_p13, %p972_p12 }
 0x10d   : > { %p975_p1 = pnand %p974_p0, %p968_p9 }
 0x10f   : > { %978 = shalt.err (!%p975_p1)
}
 0x110   : > { %s1093_s9 = smov 64   ;;  %s1094_s21 = smov 4   ;;  %v354_v58 = vpop.permute.xlu0 %353  ;;  %v870_v59 = vpop.f32.mrb[6].mxu1 }
 0x111   : > { %876 = dma.vmem_to_hbm [thread:$0]  (%p1169_p4), %s1272_s12, 256, %s1278_s17, %s1418_s8, %s1093_s9, %s1093_s9, %s1094_s21  }
 0x112   : > { %s1421_s11 = sand.u32 1, %s1073_s19   ;;  %s979_s27 = scalar_lea.vmem %s1280_s16, 256 }
 0x113   : > { %s1321_s15 = scalar_lea.sflag [#allocation3], %s1421_s11  ;;  %p980_p2 = scmp.ne.s32.totalorder %s1280_s16, %s979_s27 }
 0x114   : > { %s1095_s29 = smov [#allocation2]  }
 0x115   : > { %p981_p3 = pnand %p980_p2, %p1169_p4  ;;  %s983_s24 = sshll.u32 %s1095_s29, 4  ;;  %s984_s24 = int_to_ptr.vmem [resolvable:$false] %s983_s24 }
 0x116   : > { %s985_s25 = scalar_lea.vmem %s984_s24, 512  ;;  %p986_p6 = scmp.lt.s32.totalorder %s1280_s16, %s984_s24 }
 0x117   : > { %p982_p5 = pneg %p981_p3  ;;  %p987_p7 = scmp.lt.s32.totalorder %s985_s25, %s979_s27 }
 0x119   : > { %p988_p9 = por %p987_p7, %p986_p6 }
 0x11b   : > { %p989_p10 = pnand %p988_p9, %p982_p5 }
 0x11d   : > { %992 = shalt.err (!%p989_p10)
}
 0x11e   : > { %s993_s12 = scalar_lea.hbm %s1287_s7, 256  ;;  %s997_s29 = scalar_lea.hbm %s1413_s3, 512 }
 0x11f   : > { %p994_p11 = scmp.ne.s32.totalorder %s1287_s7, %s993_s12  ;;  %p998_p0 = scmp.lt.u32.totalorder %s1287_s7, %s1413_s3 }
 0x120   : > { %p999_p1 = scmp.lt.u32.totalorder %s997_s29, %s993_s12  ;;  %p1001_p3 = scmp.lt.u32.totalorder %s993_s12, %s1287_s7 }
 0x121   : > { %p995_p12 = pnand %p994_p11, %p1169_p4 }
 0x122   : > { %p1000_p2 = por %p999_p1, %p998_p0 }
 0x123   : > { %p996_p13 = pneg %p995_p12 }
 0x124   : > { %p1002_p5 = por %p1001_p3, %p1000_p2 }
 0x126   : > { %p1003_p6 = pnand %p1002_p5, %p996_p13 }
 0x128   : > { %1006 = shalt.err (!%p1003_p6)
}
 0x129   : > { %875 = dma.vmem_to_hbm [thread:$0]  (%p1169_p4), %s1280_s16, 256, %s1287_s7, %s1321_s15, %s1093_s9, %s1093_s9, %s1094_s21   ;;  %v485_v60 = vadd.f32 %v869_v55, %v354_v58  ;;  %v488_v61 = vadd.f32 %v870_v59, %v359_v56  ;;  %v479_v62 = vpop.f32.mrb[7].mxu1  ;;  %v477_v63 = vadd.f32 %v1290_v57, %v1269_v46 }
 0x12a   : > { %s261_s8 = scalar_lea.vmem [#allocation6], %s1254_s10  ;;  %v480_v0 = vadd.f32 %v479_v62, %v1256_v33  ;;  %s1358_s7 = scalar_lea.hbm %s1415_s5, %s1267_s14 }
 0x12b   : > { %s610_s27 = sshll.u32 %s261_s8, 4  ;;  %v842_v1 = vpack.c.bf16 %v488_v61, %v485_v60  ;;  %s1096_s15 = smov [#allocation6]   ;;  %s1352_s27 = int_to_ptr.vmem [resolvable:$true] %s610_s27 }
 0x12c   : > { %v837_v2 = vpack.c.bf16 %v480_v0, %v477_v63  ;;  %s1007_s10 = scalar_lea.vmem %s1352_s27, 256  ;;  %s1011_s12 = sshll.u32 %s1096_s15, 4  ;;  %s1012_s12 = int_to_ptr.vmem [resolvable:$false] %s1011_s12 }
 0x12d   : > { %846 = vst [vmem:[%s261_s8 + $0x8] sm:$0xff] %v842_v1   ;;  %p1008_p7 = scmp.ne.s32.totalorder %s1352_s27, %s1007_s10  ;;  %s1013_s17 = scalar_lea.vmem %s1012_s12, 512 }
 0x12e   : > { %838 = vst [vmem:[%s261_s8] sm:$0xff] %v837_v2   ;;  %p1014_p11 = scmp.lt.s32.totalorder %s1352_s27, %s1012_s12  ;;  %p1015_p12 = scmp.lt.s32.totalorder %s1013_s17, %s1007_s10 }
 0x12f   : > { %p1009_p9 = pnand %p1008_p7, %p1169_p4 }
 0x130   : > { %p1016_p13 = por %p1015_p12, %p1014_p11 }
 0x131   : > { %p1010_p10 = pneg %p1009_p9 }
 0x133   : > { %p1017_p0 = pnand %p1016_p13, %p1010_p10 }
 0x135   : > { %1020 = shalt.err (!%p1017_p0)
}
 0x136   : > { %s1021_s14 = scalar_lea.hbm %s1358_s7, 256  ;;  %s1025_s24 = scalar_lea.hbm %s1415_s5, 512 }
 0x137   : > { %p1022_p1 = scmp.ne.s32.totalorder %s1358_s7, %s1021_s14  ;;  %p1026_p5 = scmp.lt.u32.totalorder %s1358_s7, %s1415_s5 }
 0x138   : > { %p1027_p6 = scmp.lt.u32.totalorder %s1025_s24, %s1021_s14  ;;  %p1029_p9 = scmp.lt.u32.totalorder %s1021_s14, %s1358_s7 }
 0x139   : > { %p1023_p2 = pnand %p1022_p1, %p1169_p4 }
 0x13a   : > { %p1028_p7 = por %p1027_p6, %p1026_p5 }
 0x13b   : > { %p1024_p3 = pneg %p1023_p2 }
 0x13c   : > { %p1030_p10 = por %p1029_p9, %p1028_p7 }
 0x13e   : > { %p1031_p11 = pnand %p1030_p10, %p1024_p3 }
 0x140   : > { %1034 = shalt.err (!%p1031_p11)
}
 0x141   : > { %s1422_s16 = scalar_lea.sflag [#allocation5], %s1264_s13 }
 0x142   : > { %877 = dma.vmem_to_hbm [thread:$0]  (%p1169_p4), %s1352_s27, 256, %s1358_s7, %s1422_s16, %s1093_s9, %s1093_s9, %s1094_s21  }
 0x143 PF: > { %p891_p12 = scmp.ge.s32.totalorder %s1089_s23, 2  ;;  %s625_s10 = sand.u32 1, %s1069_s18  }
 0x144   : > { %s626_s15 = scalar_lea.sflag [#allocation3], %s625_s10 }
 0x145   : > { %p882_p13 = pnand %p891_p12, %p1178_p8 }
 0x147   : > { %1060 = dma.done.wait (!%p882_p13), %s626_s15, 256  }
 0x148   : > { %1062 = vsyncadd (!%p882_p13), %s626_s15, 4294967040  ;;  %s1423_s28 = sadd.s32 4294967294, %s1089_s23  }
 0x149   : > { %s634_s12 = sand.u32 1, %s1423_s28  }
 0x14a   : > { %s635_s17 = scalar_lea.sflag [#allocation5], %s634_s12 }
 0x14b   : > { %1064 = dma.done.wait (!%p882_p13), %s635_s17, 512  }
 0x14c   : > { %1066 = vsyncadd (!%p882_p13), %s635_s17, 4294966784  ;;  %s22_s23 = sadd.s32 1, %s1089_s23   ;;  %s1424_s18 = smov %s1073_s19 }
 0x14d   : > { %p19_p4 = scmp.ge.s32.totalorder %s22_s23, 4   ;;  %s1425_s19 = smov %s1077_s20 }
 0x14e   : > { %s1426_s20 = smov %s1184_s6  ;;  %s1427_s21 = smov %s1085_s22 }
 0x14f   : > { %s1428_s22 = smov %s1430_s26  ;;  %21 = sbr.rel (!%p19_p4) target bundleno = 6 (0x6), region = 99 }
 0x156   :  { %649 = vsyncpa [#allocation3], 1 }
 0x157   :  { %651 = vsyncpa [#allocation3 + $0x1], 1 }
 0x158   :  { %652 = vsyncpa [#allocation5], 1 }
 0x159   :  { %654 = vsyncpa [#allocation5 + $0x1], 1 }

</bundles_post_ra>
